<compile_context>
chip_gen: v7x
topology: tpu7x:2x2x1
jax: 0.10.0
libtpu: 0.0.40
codegen_flags: <defaults>
</compile_context>

<pallas_src>
import functools

import jax
import jax.numpy as jnp
from jax.experimental import pallas as pl
from jax.experimental.pallas import tpu as pltpu

N_EMBD = 256
BLOCK_SIZE = 128  # max seq len supported by the original module's causal mask buffer


# ----------------------------------------------------------------------------
# Fused kernel: one batch element per grid step.
#   x       (1, T, C)   f32
#   wqkv    (C, 3C)     bf16   packed [all-heads Q | all-heads K | all-heads V]
#   wp      (C, C)      bf16   (already transposed: Wp^T)
#   bias    (1, C)      f32
#   out     (1, T, C)   f32
# ----------------------------------------------------------------------------
def _mha_fused_kernel(x_ref, wqkv_ref, wp_ref, b_ref, o_ref, *, num_heads, head_size):
    C = num_heads * head_size
    T = x_ref.shape[1]

    x = x_ref[0].astype(jnp.bfloat16)                     # (T, C)
    wqkv = wqkv_ref[...]                                  # (C, 3C) bf16

    # One lane-dense MXU matmul (N = 3*C) for Q, K, V of every head; f32 accumulation.
    qkv = jnp.dot(x, wqkv, preferred_element_type=jnp.float32)   # (T, 3C) f32

    scale = C ** -0.5  # NOTE: n_embd**-0.5, exactly as in the PyTorch source

    # Causal mask, shared by all heads. Use a large finite negative instead of -inf
    # (safe even if a row were fully masked when generalizing).
    row = jax.lax.broadcasted_iota(jnp.int32, (T, T), 0)
    col = jax.lax.broadcasted_iota(jnp.int32, (T, T), 1)
    causal = col <= row

    head_outs = []
    for h in range(num_heads):                            # static loop, H is small
        qh = qkv[:, h * head_size:(h + 1) * head_size]                # (T, hs) f32
        kh = qkv[:, C + h * head_size: C + (h + 1) * head_size]       # (T, hs) f32
        vh = qkv[:, 2 * C + h * head_size: 2 * C + (h + 1) * head_size]

        wei = jnp.dot(qh.astype(jnp.bfloat16), kh.astype(jnp.bfloat16).T,
                      preferred_element_type=jnp.float32) * scale     # (T, T) f32
        wei = jnp.where(causal, wei, -1e30)

        # numerically stable softmax, stats in f32; divide on the EUP slot
        m = jnp.max(wei, axis=-1, keepdims=True)
        e = jnp.exp(wei - m)
        s = jnp.sum(e, axis=-1, keepdims=True)
        p = e * pl.reciprocal(s, approx=True)

        # dropout -> identity (eval mode)
        head_outs.append(jnp.dot(p.astype(jnp.bfloat16), vh.astype(jnp.bfloat16),
                                 preferred_element_type=jnp.float32))  # (T, hs)

    cat = jnp.concatenate(head_outs, axis=-1)              # (T, C), torch.cat head order

    # Fused output projection (dropout -> identity); lane-dense (C=256) output store.
    y = jnp.dot(cat.astype(jnp.bfloat16), wp_ref[...],
                preferred_element_type=jnp.float32) + b_ref[...]       # (T, C) f32
    o_ref[0] = y.astype(o_ref.dtype)


# ----------------------------------------------------------------------------
# Wrapper: packs weights, builds BlockSpecs, single pallas_call over grid=(B,)
# ----------------------------------------------------------------------------
def multi_head_attention_forward(x, params, *, num_heads, head_size):
    B, T, C = x.shape
    assert C == num_heads * head_size

    # params["w{q,k,v}_t"]: (H, C, hs) (transposed Linear weights).
    # Pack to (C, 3C) = [Q heads 0..H-1 | K heads 0..H-1 | V heads 0..H-1], bf16 for the MXU.
    def _flatten_heads(w):                                 # (H, C, hs) -> (C, H*hs)
        return jnp.transpose(w, (1, 0, 2)).reshape(C, num_heads * head_size)

    wqkv = jnp.concatenate(
        [_flatten_heads(params["wq_t"]),
         _flatten_heads(params["wk_t"]),
         _flatten_heads(params["wv_t"])], axis=-1).astype(jnp.bfloat16)   # (C, 3C)
    wp = params["wp_t"].astype(jnp.bfloat16)               # (C, C)
    bias = params["b_proj"]                                # (1, C) f32

    kernel = functools.partial(_mha_fused_kernel,
                               num_heads=num_heads, head_size=head_size)

    return pl.pallas_call(
        kernel,
        out_shape=jax.ShapeDtypeStruct((B, T, C), jnp.float32),
        grid_spec=pltpu.PrefetchScalarGridSpec(
            num_scalar_prefetch=0,
            grid=(B,),
            in_specs=[
                pl.BlockSpec((1, T, C), lambda b: (b, 0, 0)),
                # constant block index -> weights DMA'd once, VMEM-resident across grid
                pl.BlockSpec((C, 3 * C), lambda b: (0, 0)),
                pl.BlockSpec((C, C), lambda b: (0, 0)),
                pl.BlockSpec((1, C), lambda b: (0, 0)),
            ],
            out_specs=pl.BlockSpec((1, T, C), lambda b: (b, 0, 0)),
        ),
        compiler_params=pltpu.CompilerParams(
            dimension_semantics=("parallel",),   # batch split across TCs on v7x
        ),
    )(x, wqkv, wp, bias)


# ----------------------------------------------------------------------------
# Pure-JAX f32 reference (mirrors the PyTorch module, eval mode)
# ----------------------------------------------------------------------------
def reference_forward(x, params):
    B, T, C = x.shape
    H = params["wq_t"].shape[0]
    outs = []
    for h in range(H):
        q = x @ params["wq_t"][h]
        k = x @ params["wk_t"][h]
        v = x @ params["wv_t"][h]
        wei = (q @ jnp.swapaxes(k, -1, -2)) * (C ** -0.5)
        mask = jnp.tril(jnp.ones((T, T), dtype=bool))
        wei = jnp.where(mask, wei, -jnp.inf)
        wei = jax.nn.softmax(wei, axis=-1)
        outs.append(wei @ v)
    cat = jnp.concatenate(outs, axis=-1)
    return cat @ params["wp_t"] + params["b_proj"]


def init_params(key, num_heads, head_size, n_embd):
    ks = jax.random.split(key, 5)
    lim = 1.0 / jnp.sqrt(n_embd)
    # PyTorch Linear weight is (out, in); we store the transpose (in, out).
    wq_t = jax.random.uniform(ks[0], (num_heads, n_embd, head_size),
                              minval=-lim, maxval=lim, dtype=jnp.float32)
    wk_t = jax.random.uniform(ks[1], (num_heads, n_embd, head_size),
                              minval=-lim, maxval=lim, dtype=jnp.float32)
    wv_t = jax.random.uniform(ks[2], (num_heads, n_embd, head_size),
                              minval=-lim, maxval=lim, dtype=jnp.float32)
    wp_t = jax.random.uniform(ks[3], (n_embd, n_embd),
                              minval=-lim, maxval=lim, dtype=jnp.float32)
    b_proj = jax.random.uniform(ks[4], (1, n_embd),
                                minval=-lim, maxval=lim, dtype=jnp.float32)
    return {"wq_t": wq_t, "wk_t": wk_t, "wv_t": wv_t, "wp_t": wp_t, "b_proj": b_proj}


if __name__ == "__main__":
    B, T = 2, 8
    num_heads, head_size = 4, 64            # num_heads * head_size == n_embd (256)
    assert num_heads * head_size == N_EMBD

    key = jax.random.PRNGKey(0)
    kx, kp = jax.random.split(key)
    x = jax.random.normal(kx, (B, T, N_EMBD), dtype=jnp.float32)
    params = init_params(kp, num_heads, head_size, N_EMBD)

    out = multi_head_attention_forward(x, params, num_heads=num_heads, head_size=head_size)
    out = jax.block_until_ready(out)

    ref = reference_forward(x, params)
    assert out.shape == (B, T, N_EMBD)
    # bf16 MXU inputs + approx reciprocal -> compare against f32 reference with a
    # tolerance appropriate for bf16 (errors observed are well below this).
    assert jnp.allclose(out, ref, atol=5e-2, rtol=5e-2), "mismatch vs reference"

    print("KERNEL_OK")
</pallas_src>

<mosaic_0001>
module attributes {stable_mosaic.version = 11 : i64} {
  func.func @_mha_fused_kernel(%arg0: i32, %arg1: memref<1x8x256xf32, #tpu.memory_space<vmem>>, %arg2: memref<256x768xbf16, #tpu.memory_space<vmem>>, %arg3: memref<256x256xbf16, #tpu.memory_space<vmem>>, %arg4: memref<1x256xf32, #tpu.memory_space<vmem>>, %arg5: memref<1x8x256xf32, #tpu.memory_space<vmem>>) attributes {dimension_semantics = [#tpu.dimension_semantics<parallel>], iteration_bounds = array<i64: 2>, scalar_prefetch = 0 : i64, scratch_operands = 0 : i64, tpu.core_type = #tpu.core_type<tc>, window_params = [{transform_indices = @transform_0, window_bounds = array<i64: 1, 8, 256>}, {pipeline_mode = #tpu.pipeline_mode<synchronous>, transform_indices = @transform_1, window_bounds = array<i64: 256, 768>}, {pipeline_mode = #tpu.pipeline_mode<synchronous>, transform_indices = @transform_2, window_bounds = array<i64: 256, 256>}, {pipeline_mode = #tpu.pipeline_mode<synchronous>, transform_indices = @transform_3, window_bounds = array<i64: 1, 256>}, {transform_indices = @transform_4, window_bounds = array<i64: 1, 8, 256>}]} {
    %c0 = arith.constant 0 : index
    %c0_0 = arith.constant 0 : index
    %c0_1 = arith.constant 0 : index
    %0 = vector.load %arg1[%c0, %c0_0, %c0_1] : memref<1x8x256xf32, #tpu.memory_space<vmem>>, vector<1x8x256xf32>
    %1 = vector.shape_cast %0 : vector<1x8x256xf32> to vector<8x256xf32>
    %2 = arith.truncf %1 : vector<8x256xf32> to vector<8x256xbf16>
    %c0_2 = arith.constant 0 : index
    %c0_3 = arith.constant 0 : index
    %3 = vector.load %arg2[%c0_2, %c0_3] : memref<256x768xbf16, #tpu.memory_space<vmem>>, vector<256x768xbf16>
    %cst = arith.constant dense<0.000000e+00> : vector<8x768xf32>
    %4 = tpu.matmul %2, %3, %cst {dimension_numbers = #tpu.dot_dimension_numbers<[1], [0], [0], [1], [0, 0, 1, 1], [], []>} : vector<8x256xbf16>, vector<256x768xbf16>, vector<8x768xf32> -> vector<8x768xf32>
    %5 = tpu.iota {dimensions = array<i32: 0>} : vector<8x8xi32>
    %6 = tpu.iota {dimensions = array<i32: 1>} : vector<8x8xi32>
    %7 = arith.cmpi sle, %6, %5 : vector<8x8xi32>
    %8 = vector.extract_strided_slice %4 {offsets = [0, 0], sizes = [8, 64], strides = [1, 1]} : vector<8x768xf32> to vector<8x64xf32>
    %9 = vector.extract_strided_slice %4 {offsets = [0, 256], sizes = [8, 64], strides = [1, 1]} : vector<8x768xf32> to vector<8x64xf32>
    %10 = vector.extract_strided_slice %4 {offsets = [0, 512], sizes = [8, 64], strides = [1, 1]} : vector<8x768xf32> to vector<8x64xf32>
    %11 = arith.truncf %8 : vector<8x64xf32> to vector<8x64xbf16>
    %12 = arith.truncf %9 : vector<8x64xf32> to vector<8x64xbf16>
    %13 = tpu.transpose %12, [1, 0] : vector<8x64xbf16> -> vector<64x8xbf16>
    %cst_4 = arith.constant dense<0.000000e+00> : vector<8x8xf32>
    %14 = tpu.matmul %11, %13, %cst_4 {dimension_numbers = #tpu.dot_dimension_numbers<[1], [0], [0], [1], [0, 0, 1, 1], [], []>} : vector<8x64xbf16>, vector<64x8xbf16>, vector<8x8xf32> -> vector<8x8xf32>
    %cst_5 = arith.constant 6.250000e-02 : f32
    %15 = vector.broadcast %cst_5 : f32 to vector<8x8xf32>
    %16 = arith.mulf %14, %15 : vector<8x8xf32>
    %cst_6 = arith.constant -1.000000e+30 : f32
    %17 = vector.broadcast %cst_6 : f32 to vector<8x8xf32>
    %18 = arith.select %7, %16, %17 : vector<8x8xi1>, vector<8x8xf32>
    %cst_7 = arith.constant dense<0xFF800000> : vector<8xf32>
    %19 = vector.multi_reduction <maximumf>, %18, %cst_7 [1] : vector<8x8xf32> to vector<8xf32>
    %20 = vector.shape_cast %19 : vector<8xf32> to vector<8x1xf32>
    %21 = vector.broadcast %20 : vector<8x1xf32> to vector<8x8xf32>
    %22 = arith.subf %18, %21 : vector<8x8xf32>
    %23 = math.exp %22 : vector<8x8xf32>
    %cst_8 = arith.constant dense<0.000000e+00> : vector<8xf32>
    %24 = vector.multi_reduction <add>, %23, %cst_8 [1] : vector<8x8xf32> to vector<8xf32>
    %25 = vector.shape_cast %24 : vector<8xf32> to vector<8x1xf32>
    %26 = tpu.reciprocal %25 {approx = true} : vector<8x1xf32> -> vector<8x1xf32>
    %27 = vector.broadcast %26 : vector<8x1xf32> to vector<8x8xf32>
    %28 = arith.mulf %23, %27 : vector<8x8xf32>
    %29 = arith.truncf %28 : vector<8x8xf32> to vector<8x8xbf16>
    %30 = arith.truncf %10 : vector<8x64xf32> to vector<8x64xbf16>
    %cst_9 = arith.constant dense<0.000000e+00> : vector<8x64xf32>
    %31 = tpu.matmul %29, %30, %cst_9 {dimension_numbers = #tpu.dot_dimension_numbers<[1], [0], [0], [1], [0, 0, 1, 1], [], []>} : vector<8x8xbf16>, vector<8x64xbf16>, vector<8x64xf32> -> vector<8x64xf32>
    %32 = vector.extract_strided_slice %4 {offsets = [0, 64], sizes = [8, 64], strides = [1, 1]} : vector<8x768xf32> to vector<8x64xf32>
    %33 = vector.extract_strided_slice %4 {offsets = [0, 320], sizes = [8, 64], strides = [1, 1]} : vector<8x768xf32> to vector<8x64xf32>
    %34 = vector.extract_strided_slice %4 {offsets = [0, 576], sizes = [8, 64], strides = [1, 1]} : vector<8x768xf32> to vector<8x64xf32>
    %35 = arith.truncf %32 : vector<8x64xf32> to vector<8x64xbf16>
    %36 = arith.truncf %33 : vector<8x64xf32> to vector<8x64xbf16>
    %37 = tpu.transpose %36, [1, 0] : vector<8x64xbf16> -> vector<64x8xbf16>
    %cst_10 = arith.constant dense<0.000000e+00> : vector<8x8xf32>
    %38 = tpu.matmul %35, %37, %cst_10 {dimension_numbers = #tpu.dot_dimension_numbers<[1], [0], [0], [1], [0, 0, 1, 1], [], []>} : vector<8x64xbf16>, vector<64x8xbf16>, vector<8x8xf32> -> vector<8x8xf32>
    %cst_11 = arith.constant 6.250000e-02 : f32
    %39 = vector.broadcast %cst_11 : f32 to vector<8x8xf32>
    %40 = arith.mulf %38, %39 : vector<8x8xf32>
    %cst_12 = arith.constant -1.000000e+30 : f32
    %41 = vector.broadcast %cst_12 : f32 to vector<8x8xf32>
    %42 = arith.select %7, %40, %41 : vector<8x8xi1>, vector<8x8xf32>
    %cst_13 = arith.constant dense<0xFF800000> : vector<8xf32>
    %43 = vector.multi_reduction <maximumf>, %42, %cst_13 [1] : vector<8x8xf32> to vector<8xf32>
    %44 = vector.shape_cast %43 : vector<8xf32> to vector<8x1xf32>
    %45 = vector.broadcast %44 : vector<8x1xf32> to vector<8x8xf32>
    %46 = arith.subf %42, %45 : vector<8x8xf32>
    %47 = math.exp %46 : vector<8x8xf32>
    %cst_14 = arith.constant dense<0.000000e+00> : vector<8xf32>
    %48 = vector.multi_reduction <add>, %47, %cst_14 [1] : vector<8x8xf32> to vector<8xf32>
    %49 = vector.shape_cast %48 : vector<8xf32> to vector<8x1xf32>
    %50 = tpu.reciprocal %49 {approx = true} : vector<8x1xf32> -> vector<8x1xf32>
    %51 = vector.broadcast %50 : vector<8x1xf32> to vector<8x8xf32>
    %52 = arith.mulf %47, %51 : vector<8x8xf32>
    %53 = arith.truncf %52 : vector<8x8xf32> to vector<8x8xbf16>
    %54 = arith.truncf %34 : vector<8x64xf32> to vector<8x64xbf16>
    %cst_15 = arith.constant dense<0.000000e+00> : vector<8x64xf32>
    %55 = tpu.matmul %53, %54, %cst_15 {dimension_numbers = #tpu.dot_dimension_numbers<[1], [0], [0], [1], [0, 0, 1, 1], [], []>} : vector<8x8xbf16>, vector<8x64xbf16>, vector<8x64xf32> -> vector<8x64xf32>
    %56 = vector.extract_strided_slice %4 {offsets = [0, 128], sizes = [8, 64], strides = [1, 1]} : vector<8x768xf32> to vector<8x64xf32>
    %57 = vector.extract_strided_slice %4 {offsets = [0, 384], sizes = [8, 64], strides = [1, 1]} : vector<8x768xf32> to vector<8x64xf32>
    %58 = vector.extract_strided_slice %4 {offsets = [0, 640], sizes = [8, 64], strides = [1, 1]} : vector<8x768xf32> to vector<8x64xf32>
    %59 = arith.truncf %56 : vector<8x64xf32> to vector<8x64xbf16>
    %60 = arith.truncf %57 : vector<8x64xf32> to vector<8x64xbf16>
    %61 = tpu.transpose %60, [1, 0] : vector<8x64xbf16> -> vector<64x8xbf16>
    %cst_16 = arith.constant dense<0.000000e+00> : vector<8x8xf32>
    %62 = tpu.matmul %59, %61, %cst_16 {dimension_numbers = #tpu.dot_dimension_numbers<[1], [0], [0], [1], [0, 0, 1, 1], [], []>} : vector<8x64xbf16>, vector<64x8xbf16>, vector<8x8xf32> -> vector<8x8xf32>
    %cst_17 = arith.constant 6.250000e-02 : f32
    %63 = vector.broadcast %cst_17 : f32 to vector<8x8xf32>
    %64 = arith.mulf %62, %63 : vector<8x8xf32>
    %cst_18 = arith.constant -1.000000e+30 : f32
    %65 = vector.broadcast %cst_18 : f32 to vector<8x8xf32>
    %66 = arith.select %7, %64, %65 : vector<8x8xi1>, vector<8x8xf32>
    %cst_19 = arith.constant dense<0xFF800000> : vector<8xf32>
    %67 = vector.multi_reduction <maximumf>, %66, %cst_19 [1] : vector<8x8xf32> to vector<8xf32>
    %68 = vector.shape_cast %67 : vector<8xf32> to vector<8x1xf32>
    %69 = vector.broadcast %68 : vector<8x1xf32> to vector<8x8xf32>
    %70 = arith.subf %66, %69 : vector<8x8xf32>
    %71 = math.exp %70 : vector<8x8xf32>
    %cst_20 = arith.constant dense<0.000000e+00> : vector<8xf32>
    %72 = vector.multi_reduction <add>, %71, %cst_20 [1] : vector<8x8xf32> to vector<8xf32>
    %73 = vector.shape_cast %72 : vector<8xf32> to vector<8x1xf32>
    %74 = tpu.reciprocal %73 {approx = true} : vector<8x1xf32> -> vector<8x1xf32>
    %75 = vector.broadcast %74 : vector<8x1xf32> to vector<8x8xf32>
    %76 = arith.mulf %71, %75 : vector<8x8xf32>
    %77 = arith.truncf %76 : vector<8x8xf32> to vector<8x8xbf16>
    %78 = arith.truncf %58 : vector<8x64xf32> to vector<8x64xbf16>
    %cst_21 = arith.constant dense<0.000000e+00> : vector<8x64xf32>
    %79 = tpu.matmul %77, %78, %cst_21 {dimension_numbers = #tpu.dot_dimension_numbers<[1], [0], [0], [1], [0, 0, 1, 1], [], []>} : vector<8x8xbf16>, vector<8x64xbf16>, vector<8x64xf32> -> vector<8x64xf32>
    %80 = vector.extract_strided_slice %4 {offsets = [0, 192], sizes = [8, 64], strides = [1, 1]} : vector<8x768xf32> to vector<8x64xf32>
    %81 = vector.extract_strided_slice %4 {offsets = [0, 448], sizes = [8, 64], strides = [1, 1]} : vector<8x768xf32> to vector<8x64xf32>
    %82 = vector.extract_strided_slice %4 {offsets = [0, 704], sizes = [8, 64], strides = [1, 1]} : vector<8x768xf32> to vector<8x64xf32>
    %83 = arith.truncf %80 : vector<8x64xf32> to vector<8x64xbf16>
    %84 = arith.truncf %81 : vector<8x64xf32> to vector<8x64xbf16>
    %85 = tpu.transpose %84, [1, 0] : vector<8x64xbf16> -> vector<64x8xbf16>
    %cst_22 = arith.constant dense<0.000000e+00> : vector<8x8xf32>
    %86 = tpu.matmul %83, %85, %cst_22 {dimension_numbers = #tpu.dot_dimension_numbers<[1], [0], [0], [1], [0, 0, 1, 1], [], []>} : vector<8x64xbf16>, vector<64x8xbf16>, vector<8x8xf32> -> vector<8x8xf32>
    %cst_23 = arith.constant 6.250000e-02 : f32
    %87 = vector.broadcast %cst_23 : f32 to vector<8x8xf32>
    %88 = arith.mulf %86, %87 : vector<8x8xf32>
    %cst_24 = arith.constant -1.000000e+30 : f32
    %89 = vector.broadcast %cst_24 : f32 to vector<8x8xf32>
    %90 = arith.select %7, %88, %89 : vector<8x8xi1>, vector<8x8xf32>
    %cst_25 = arith.constant dense<0xFF800000> : vector<8xf32>
    %91 = vector.multi_reduction <maximumf>, %90, %cst_25 [1] : vector<8x8xf32> to vector<8xf32>
    %92 = vector.shape_cast %91 : vector<8xf32> to vector<8x1xf32>
    %93 = vector.broadcast %92 : vector<8x1xf32> to vector<8x8xf32>
    %94 = arith.subf %90, %93 : vector<8x8xf32>
    %95 = math.exp %94 : vector<8x8xf32>
    %cst_26 = arith.constant dense<0.000000e+00> : vector<8xf32>
    %96 = vector.multi_reduction <add>, %95, %cst_26 [1] : vector<8x8xf32> to vector<8xf32>
    %97 = vector.shape_cast %96 : vector<8xf32> to vector<8x1xf32>
    %98 = tpu.reciprocal %97 {approx = true} : vector<8x1xf32> -> vector<8x1xf32>
    %99 = vector.broadcast %98 : vector<8x1xf32> to vector<8x8xf32>
    %100 = arith.mulf %95, %99 : vector<8x8xf32>
    %101 = arith.truncf %100 : vector<8x8xf32> to vector<8x8xbf16>
    %102 = arith.truncf %82 : vector<8x64xf32> to vector<8x64xbf16>
    %cst_27 = arith.constant dense<0.000000e+00> : vector<8x64xf32>
    %103 = tpu.matmul %101, %102, %cst_27 {dimension_numbers = #tpu.dot_dimension_numbers<[1], [0], [0], [1], [0, 0, 1, 1], [], []>} : vector<8x8xbf16>, vector<8x64xbf16>, vector<8x64xf32> -> vector<8x64xf32>
    %104 = tpu.concatenate %31, %55, %79, %103 in 1 : vector<8x64xf32>, vector<8x64xf32>, vector<8x64xf32>, vector<8x64xf32> -> vector<8x256xf32>
    %105 = arith.truncf %104 : vector<8x256xf32> to vector<8x256xbf16>
    %c0_28 = arith.constant 0 : index
    %c0_29 = arith.constant 0 : index
    %106 = vector.load %arg3[%c0_28, %c0_29] : memref<256x256xbf16, #tpu.memory_space<vmem>>, vector<256x256xbf16>
    %cst_30 = arith.constant dense<0.000000e+00> : vector<8x256xf32>
    %107 = tpu.matmul %105, %106, %cst_30 {dimension_numbers = #tpu.dot_dimension_numbers<[1], [0], [0], [1], [0, 0, 1, 1], [], []>} : vector<8x256xbf16>, vector<256x256xbf16>, vector<8x256xf32> -> vector<8x256xf32>
    %c0_31 = arith.constant 0 : index
    %c0_32 = arith.constant 0 : index
    %108 = vector.load %arg4[%c0_31, %c0_32] : memref<1x256xf32, #tpu.memory_space<vmem>>, vector<1x256xf32>
    %109 = vector.broadcast %108 : vector<1x256xf32> to vector<8x256xf32>
    %110 = arith.addf %107, %109 : vector<8x256xf32>
    %c0_33 = arith.constant 0 : index
    %c0_34 = arith.constant 0 : index
    %c0_35 = arith.constant 0 : index
    %111 = vector.load %arg5[%c0_33, %c0_34, %c0_35] : memref<1x8x256xf32, #tpu.memory_space<vmem>>, vector<1x8x256xf32>
    %112 = vector.shape_cast %111 : vector<1x8x256xf32> to vector<8x256xf32>
    %113 = vector.shape_cast %110 : vector<8x256xf32> to vector<1x8x256xf32>
    tpu.vector_store %arg5[%c0_33, %c0_34, %c0_35], %113 {strides = array<i32>} : memref<1x8x256xf32, #tpu.memory_space<vmem>>, vector<1x8x256xf32>,
    return
  }
  func.func @transform_0(%arg0: i32) -> (i32, i32, i32) {
    %c0_i32 = arith.constant 0 : i32
    %c0_i32_0 = arith.constant 0 : i32
    %c0_i32_1 = arith.constant 0 : i32
    return %arg0, %c0_i32, %c0_i32_0 : i32, i32, i32
  }
  func.func @transform_1(%arg0: i32) -> (i32, i32) {
    %c0_i32 = arith.constant 0 : i32
    %c0_i32_0 = arith.constant 0 : i32
    %c0_i32_1 = arith.constant 0 : i32
    return %c0_i32, %c0_i32_0 : i32, i32
  }
  func.func @transform_2(%arg0: i32) -> (i32, i32) {
    %c0_i32 = arith.constant 0 : i32
    %c0_i32_0 = arith.constant 0 : i32
    %c0_i32_1 = arith.constant 0 : i32
    return %c0_i32, %c0_i32_0 : i32, i32
  }
  func.func @transform_3(%arg0: i32) -> (i32, i32) {
    %c0_i32 = arith.constant 0 : i32
    %c0_i32_0 = arith.constant 0 : i32
    %c0_i32_1 = arith.constant 0 : i32
    return %c0_i32, %c0_i32_0 : i32, i32
  }
  func.func @transform_4(%arg0: i32) -> (i32, i32, i32) {
    %c0_i32 = arith.constant 0 : i32
    %c0_i32_0 = arith.constant 0 : i32
    %c0_i32_1 = arith.constant 0 : i32
    return %arg0, %c0_i32, %c0_i32_0 : i32, i32, i32
  }
}

</mosaic_0001>

<bundles_post_ra>
// kernel: tpu_custom_call.1
= control target key start
LH: loop header
LB: loop body
LE: loop exit
PB: predicated region body
PF: predicated region fallthrough
CT: control target
= control target key end

     0   :  { %9 = vsyncpa [#allocation3], 0  ;;  %s2806_s0 = inlined_call_operand.hbm [shape: f32[2,8,256], index: 0, kind: input, shape index: {}]   ;;  %s2807_s1 = inlined_call_operand.hbm [shape: bf16[256,768], index: 1, kind: input, shape index: {}]   ;;  %s2808_s2 = inlined_call_operand.hbm [shape: bf16[256,256], index: 2, kind: input, shape index: {}]   ;;  %s2809_s3 = inlined_call_operand.vmem [shape: f32[1,256], index: 3, kind: input, shape index: {}]   ;;  %s2810_s4 = inlined_call_operand.hbm [shape: f32[2,8,256], index: 4, kind: output, shape index: {}]  }
   0x1   :  { %11 = vsyncpa [#allocation3 + $0x1], 0 }
   0x2   :  { %12 = vsyncpa [#allocation6], 0 }
   0x3   :  { %13 = vsyncpa [#allocation4], 0 }
   0x4   :  { %15 = vsyncpa [#allocation4 + $0x1], 0  ;;  %s2467_s15 = smov 0   ;;  %s2469_s16 = smov 0  }
   0x5   :  { %s2471_s17 = smov 0   ;;  %s2473_s18 = smov 0  }
   0x6 LB: > { %s2488_s19 = sadd.s32 4294967295, %s2429_s18   ;;  %s1766_s20 = sadd.s32 4294967294, %s2429_s18   ;;  %s2429_s18 = sphi %s2473_s18, %s2830_s18   ;;  %s2425_s17 = sphi %s2471_s17, %s2829_s17   ;;  %s2421_s16 = sphi %s2469_s16, %s2828_s16   ;;  %s2417_s15 = sphi %s2467_s15, %s2827_s15  }
   0x7   : > { %p41_p0 = scmp.ne.s32.totalorder %s2421_s16, %s2417_s15  ;;  %p2811_p1 = scmp.eq.s32.totalorder %s2488_s19, 0 }
   0x8   : > { %p134_p3 = scmp.eq.s32.totalorder %s1766_s20, 1  ;;  %p1767_p5 = scmp.ge.s32.totalorder %s2429_s18, 1 }
   0x9   : > { %p2497_p4 = por %p2811_p1, %p41_p0  ;;  %p141_p7 = scmp.lt.s32.totalorder %s2429_s18, 3 }
   0xa   : > { %p2502_p6 = por %p134_p3, %p41_p0  ;;  %s2431_s24 = smov [#allocation5]  }
   0xb   : > { %s2814_s21 = scalar_select %p2497_p4, 1, 0 }
   0xc   : > { %s2815_s22 = scalar_select %p2502_p6, 1, 0 }
   0xd   : > { %p2507_p8 = pnand %p1767_p5, %p141_p7  ;;  %s153_s25 = sshll.u32 %s2431_s24, 4  ;;  %s2511_s25 = int_to_ptr.vmem [resolvable:$true] %s153_s25 }
   0xe   : > { %s2432_s27 = smov [#allocation7]   ;;  %s2273_s5 = scalar_lea.hbm %s2807_s1, 12288 }
   0xf   : > { %p1998_p9 = pneg %p2507_p8  ;;  %s166_s28 = sshll.u32 %s2432_s27, 4  ;;  %s2522_s28 = int_to_ptr.vmem [resolvable:$true] %s166_s28 }
  0x10   : > { %p2274_p12 = scmp.ne.s32.totalorder %s2807_s1, %s2273_s5  ;;  %p2280_p5 = scmp.lt.u32.totalorder %s2273_s5, %s2807_s1 }
  0x11   : > { %p2518_p11 = pnand %p1998_p9, %p2811_p1 }
  0x13   : > { %p2275_p13 = pneg %p2518_p11 }
  0x15   : > { %p2276_p0 = pnand %p2275_p13, %p2274_p12 }
  0x17   : > { %p2277_p3 = pneg %p2276_p0 }
  0x19   : > { %p2282_p7 = pnand %p2280_p5, %p2277_p3 }
  0x1b   : > { %2285 = shalt.err (!%p2282_p7)
}
  0x1c   : > { %s2286_s10 = scalar_lea.vmem %s2511_s25, 12288  ;;  %p2294_p2 = scmp.lt.s32.totalorder %s2511_s25, %s2511_s25 }
  0x1d   : > { %p2287_p9 = scmp.ne.s32.totalorder %s2511_s25, %s2286_s10  ;;  %p2295_p12 = scmp.lt.s32.totalorder %s2286_s10, %s2286_s10 }
  0x1f   : > { %p2289_p10 = pnand %p2287_p9, %p2275_p13  ;;  %p2296_p0 = por %p2295_p12, %p2294_p2 }
  0x21   : > { %p2290_p1 = pneg %p2289_p10 }
  0x23   : > { %p2297_p6 = pnand %p2296_p0, %p2290_p1 }
  0x25   : > { %2300 = shalt.err (!%p2297_p6)
}
  0x26   : > { %s2433_s11 = smov 384   ;;  %s2434_s12 = smov 24  }
  0x27   : > { %2001 = dma.hbm_to_vmem [thread:$0]  (!%p2518_p11), %s2807_s1, 12288, %s2511_s25, [#allocation6], %s2433_s11, %s2433_s11, %s2434_s12  }
  0x28   : > { %s2301_s27 = scalar_lea.hbm %s2808_s2, 4096 }
  0x29   : > { %p2302_p2 = scmp.ne.s32.totalorder %s2808_s2, %s2301_s27  ;;  %p2308_p10 = scmp.lt.u32.totalorder %s2301_s27, %s2808_s2 }
  0x2b   : > { %p2304_p1 = pnand %p2302_p2, %p2275_p13 }
  0x2d   : > { %p2305_p6 = pneg %p2304_p1 }
  0x2f   : > { %p2310_p3 = pnand %p2308_p10, %p2305_p6 }
  0x31   : > { %2313 = shalt.err (!%p2310_p3)
}
  0x32   : > { %s2314_s25 = scalar_lea.vmem %s2522_s28, 4096  ;;  %p2322_p12 = scmp.lt.s32.totalorder %s2522_s28, %s2522_s28 }
  0x33   : > { %p2315_p5 = scmp.ne.s32.totalorder %s2522_s28, %s2314_s25  ;;  %p2323_p0 = scmp.lt.s32.totalorder %s2314_s25, %s2314_s25 }
  0x35   : > { %p2317_p7 = pnand %p2315_p5, %p2275_p13  ;;  %p2324_p2 = por %p2323_p0, %p2322_p12 }
  0x37   : > { %p2318_p9 = pneg %p2317_p7 }
  0x39   : > { %p2325_p1 = pnand %p2324_p2, %p2318_p9 }
  0x3b   : > { %2328 = shalt.err (!%p2325_p1)
}
  0x3c   : > { %s2435_s7 = smov 128   ;;  %s2436_s8 = smov 8  }
  0x3d   : > { %2004 = dma.hbm_to_vmem [thread:$0]  (!%p2518_p11), %s2808_s2, 4096, %s2522_s28, [#allocation6], %s2435_s7, %s2435_s7, %s2436_s8  }
  0x3e   : > { %s2577_s11 = sadd.s32 1, %s2429_s18   ;;  %s28_s13 = sadd.s32 1, %s2425_s17 }
  0x3f   : > { %s25_s12 = ssub.s32 %s2429_s18, %s2577_s11  ;;  %p35_p6 = scmp.ne.s32.totalorder %s2425_s17, %s2421_s16 }
  0x40   : > { %p26_p13 = scmp.eq.s32.totalorder %s25_s12, 0  ;;  %p36_p10 = scmp.eq.s32.totalorder %s2429_s18, 0 }
  0x41   : > { %p2818_p5 = scmp.eq.s32.totalorder %s2488_s19, 1  ;;  %p2015_p9 = scmp.lt.s32.totalorder %s2429_s18, 2 }
  0x42   : > { %s2586_s14 = scalar_select %p26_p13, %s2425_s17, %s28_s13  }
  0x43   : > { %p37_p3 = por %p36_p10, %p35_p6  ;;  %p2590_p7 = por %p2818_p5, %p35_p6 }
  0x44   : > { %s183_s26 = sand.u32 1, %s2425_s17   ;;  %s1920_s28 = sshll.u32 %s2429_s18, 8 }
  0x45   : > { %s2819_s20 = scalar_select %p2590_p7, 1, 0 }
  0x46   : > { %s1771_s24 = sshll.u32 %s183_s26, 4  ;;  %s2600_s30 = scalar_lea.hbm %s2806_s0, %s1920_s28 }
  0x47   : > { %s187_s5 = scalar_lea.vmem [#allocation2], %s1771_s24  ;;  %p2604_p11 = pnand %p2015_p9, %p37_p3 }
  0x48   : > { %s195_s6 = sshll.u32 %s187_s5, 4  ;;  %s184_s7 = scalar_lea.sflag [#allocation3], %s183_s26  ;;  %s2602_s6 = int_to_ptr.vmem [resolvable:$true] %s195_s6 }
  0x49   : > { %s2329_s8 = scalar_lea.hbm %s2600_s30, 256  ;;  %p2331_p0 = pneg %p2604_p11 }
  0x4a   : > { %p2330_p12 = scmp.ne.s32.totalorder %s2600_s30, %s2329_s8  ;;  %s2334_s12 = scalar_lea.hbm %s2806_s0, 512 }
  0x4b   : > { %p2335_p13 = scmp.lt.u32.totalorder %s2600_s30, %s2806_s0  ;;  %p2336_p6 = scmp.lt.u32.totalorder %s2334_s12, %s2329_s8 }
  0x4c   : > { %p2332_p2 = pnand %p2331_p0, %p2330_p12  ;;  %p2338_p3 = scmp.lt.u32.totalorder %s2329_s8, %s2600_s30 }
  0x4d   : > { %p2337_p10 = por %p2336_p6, %p2335_p13 }
  0x4e   : > { %p2333_p1 = pneg %p2332_p2 }
  0x4f   : > { %p2339_p5 = por %p2338_p3, %p2337_p10 }
  0x51   : > { %p2340_p9 = pnand %p2339_p5, %p2333_p1 }
  0x53   : > { %2343 = shalt.err (!%p2340_p9)
}
  0x54   : > { %s2344_s26 = scalar_lea.vmem %s2602_s6, 256  ;;  %s2437_s28 = smov [#allocation2]  }
  0x55   : > { %p2345_p12 = scmp.ne.s32.totalorder %s2602_s6, %s2344_s26  ;;  %s2349_s27 = sshll.u32 %s2437_s28, 4  ;;  %s2350_s27 = int_to_ptr.vmem [resolvable:$false] %s2349_s27 }
  0x56   : > { %s2351_s29 = scalar_lea.vmem %s2350_s27, 512  ;;  %p2352_p4 = scmp.lt.s32.totalorder %s2602_s6, %s2350_s27 }
  0x57   : > { %p2347_p2 = pnand %p2345_p12, %p2331_p0  ;;  %p2353_p13 = scmp.lt.s32.totalorder %s2351_s29, %s2344_s26 }
  0x59   : > { %p2348_p7 = pneg %p2347_p2  ;;  %p2354_p6 = por %p2353_p13, %p2352_p4 }
  0x5b   : > { %p2355_p10 = pnand %p2354_p6, %p2348_p7 }
  0x5d   : > { %2358 = shalt.err (!%p2355_p10)
}
  0x5e   : > { %2008 = dma.hbm_to_vmem [thread:$0]  (!%p2604_p11), %s2600_s30, 256, %s2602_s6, %s184_s7  }
  0x5f   : > { %204 = sbr.rel (%p2507_p8) target bundleno = 3105 (0xc21), region = 36  ;;  %s2636_s5 = sand.u32 (!%p2507_p8), 1, %s2421_s16  }
  0x60   : > { %s1775_s8 = sshll.u32 (!%p2507_p8), %s2636_s5, 4  ;;  %s207_s9 = scalar_lea.sflag (!%p2507_p8), [#allocation3], %s2636_s5 }
  0x61   : > { %s2642_s10 = scalar_lea.vmem (!%p2507_p8), [#allocation2], %s1775_s8  ;;  %p2821_p4 = scmp.ne.s32.totalorder (!%p2507_p8), %s2814_s21, 0 }
  0x66   : > { %2404 = dma.done.wait (%p2821_p4), %s207_s9, 256  }
  0x67   : > { %2406 = vsyncadd (%p2821_p4), %s207_s9, 4294967040  ;;  %p2822_p7 = scmp.eq.s32.totalorder %s2488_s19, 0 }
  0x69   : > { %2408 = dma.done.wait (%p2822_p7), [#allocation6], 16384   ;;  %p2823_p8 = pmov %p2822_p7 }
  0x6a   : > { %v2065_v0 = vld [vmem:[#allocation5 + $0xc] ss:$24 sps:$4 sm:$0xff]   ;;  %v2067_v1 = vld [vmem:[#allocation5 + $0x8] ss:$24 sps:$4 sm:$0xff]   ;;  %v2068_v2 = vld [vmem:[#allocation5 + $0x3c] ss:$24 sps:$4 sm:$0xff]  }
  0x6b   : > { %2410 = vsyncadd (%p2823_p8), [#allocation6], 4294950912  ;;  %865 = vmatprep.subr.bf16.mxu1 %v2065_v0  ;;  %v2070_v3 = vld [vmem:[#allocation5 + $0x38] ss:$24 sps:$4 sm:$0xff]   ;;  %v2071_v4 = vld [vmem:[#allocation5 + $0x4] ss:$24 sps:$4 sm:$0xff]  }
  0x6c   : > { %866 = vmatpush1.bf16.msra.mxu1 %v2067_v1  ;;  %v2073_v5 = vld [vmem:[#allocation5] ss:$24 sps:$4 sm:$0xff]   ;;  %v2074_v6 = vld [vmem:[#allocation5 + $0x6c] ss:$24 sps:$4 sm:$0xff]   ;;  %824 = vmatprep.subr.bf16.mxu0 %v2071_v4  ;;  %v2079_v8 = vld [vmem:[#allocation5 + $0x30] ss:$24 sps:$4 sm:$0xff]  }
  0x6d   : > { %867 = vmatprep.subr.bf16.mxu1 %v2068_v2  ;;  %825 = vmatpush1.bf16.msra.mxu0 %v2073_v5  ;;  %v2077_v7 = vld [vmem:[#allocation5 + $0x34] ss:$24 sps:$4 sm:$0xff]   ;;  %v2076_v9 = vld [vmem:[#allocation5 + $0x68] ss:$24 sps:$4 sm:$0xff]   ;;  %v2083_v11 = vld [vmem:[#allocation5 + $0x64] ss:$24 sps:$4 sm:$0xff]  }
  0x6e   : > { %v2080_v10 = vld [vmem:[#allocation5 + $0x9c] ss:$24 sps:$4 sm:$0xff]   ;;  %826 = vmatprep.subr.bf16.mxu0 %v2077_v7  ;;  %v2085_v12 = vld [vmem:[#allocation5 + $0x60] ss:$24 sps:$4 sm:$0xff]   ;;  %v2086_v15 = vld [vmem:[#allocation5 + $0xcc] ss:$24 sps:$4 sm:$0xff]  }
  0x6f   : > { %v2082_v13 = vld [vmem:[#allocation5 + $0x98] ss:$24 sps:$4 sm:$0xff]   ;;  %v2089_v14 = vld [vmem:[#allocation5 + $0x94] ss:$24 sps:$4 sm:$0xff]   ;;  %v2088_v17 = vld [vmem:[#allocation5 + $0xc8] ss:$24 sps:$4 sm:$0xff]  }
  0x70   : > { %868 = vmatpush1.bf16.msra.mxu1 %v2070_v3  ;;  %v2091_v16 = vld [vmem:[#allocation5 + $0x90] ss:$24 sps:$4 sm:$0xff]   ;;  %v2095_v18 = vld [vmem:[#allocation5 + $0xc4] ss:$24 sps:$4 sm:$0xff]   ;;  %v2097_v20 = vld [vmem:[#allocation5 + $0xc0] ss:$24 sps:$4 sm:$0xff]  }
  0x71   : > { %869 = vmatprep.subr.bf16.mxu1 %v2074_v6  ;;  %827 = vmatpush1.bf16.msra.mxu0 %v2079_v8  ;;  %v2092_v19 = vld [vmem:[#allocation5 + $0xfc] ss:$24 sps:$4 sm:$0xff]   ;;  %v2094_v21 = vld [vmem:[#allocation5 + $0xf8] ss:$24 sps:$4 sm:$0xff]   ;;  %v2098_v23 = vld [vmem:[#allocation5 + $0x12c] ss:$24 sps:$4 sm:$0xff]  }
  0x72   : > { %828 = vmatprep.subr.bf16.mxu0 %v2083_v11  ;;  %v2101_v22 = vld [vmem:[#allocation5 + $0xf4] ss:$24 sps:$4 sm:$0xff]   ;;  %v2103_v24 = vld [vmem:[#allocation5 + $0xf0] ss:$24 sps:$4 sm:$0xff]   ;;  %v2107_v26 = vld [vmem:[#allocation5 + $0x124] ss:$24 sps:$4 sm:$0xff]  }
  0x73   : > { %v2100_v25 = vld [vmem:[#allocation5 + $0x128] ss:$24 sps:$4 sm:$0xff]   ;;  %v2104_v27 = vld [vmem:[#allocation5 + $0x15c] ss:$24 sps:$4 sm:$0xff]   ;;  %v2106_v29 = vld [vmem:[#allocation5 + $0x158] ss:$24 sps:$4 sm:$0xff]  }
  0x74   : > { %870 = vmatpush1.bf16.msra.mxu1 %v2076_v9  ;;  %v2109_v28 = vld [vmem:[#allocation5 + $0x120] ss:$24 sps:$4 sm:$0xff]   ;;  %v2113_v30 = vld [vmem:[#allocation5 + $0x154] ss:$24 sps:$4 sm:$0xff]   ;;  %v2115_v32 = vld [vmem:[#allocation5 + $0x150] ss:$24 sps:$4 sm:$0xff]  }
  0x75   : > { %871 = vmatprep.subr.bf16.mxu1 %v2080_v10  ;;  %829 = vmatpush1.bf16.msra.mxu0 %v2085_v12  ;;  %v2110_v31 = vld [vmem:[#allocation5 + $0x18c] ss:$24 sps:$4 sm:$0xff]   ;;  %v2112_v33 = vld [vmem:[#allocation5 + $0x188] ss:$24 sps:$4 sm:$0xff]   ;;  %v2116_v35 = vld [vmem:[#allocation5 + $0x1bc] ss:$24 sps:$4 sm:$0xff]  }
  0x76   : > { %830 = vmatprep.subr.bf16.mxu0 %v2089_v14  ;;  %v2119_v34 = vld [vmem:[#allocation5 + $0x184] ss:$24 sps:$4 sm:$0xff]   ;;  %v2121_v36 = vld [vmem:[#allocation5 + $0x180] ss:$24 sps:$4 sm:$0xff]   ;;  %v2125_v38 = vld [vmem:[#allocation5 + $0x1b4] ss:$24 sps:$4 sm:$0xff]  }
  0x77   : > { %v2118_v37 = vld [vmem:[#allocation5 + $0x1b8] ss:$24 sps:$4 sm:$0xff]   ;;  %v2122_v39 = vld [vmem:[#allocation5 + $0x1ec] ss:$24 sps:$4 sm:$0xff]   ;;  %v2124_v41 = vld [vmem:[#allocation5 + $0x1e8] ss:$24 sps:$4 sm:$0xff]  }
  0x78   : > { %872 = vmatpush1.bf16.msra.mxu1 %v2082_v13  ;;  %v2127_v40 = vld [vmem:[#allocation5 + $0x1b0] ss:$24 sps:$4 sm:$0xff]   ;;  %v2131_v42 = vld [vmem:[#allocation5 + $0x1e4] ss:$24 sps:$4 sm:$0xff]   ;;  %v2133_v45 = vld [vmem:[#allocation5 + $0x1e0] ss:$24 sps:$4 sm:$0xff]  }
  0x79   : > { %873 = vmatprep.subr.bf16.mxu1 %v2086_v15  ;;  %831 = vmatpush1.bf16.msra.mxu0 %v2091_v16  ;;  %v2128_v43 = vld [vmem:[#allocation5 + $0x21c] ss:$24 sps:$4 sm:$0xff]   ;;  %v2130_v44 = vld [vmem:[#allocation5 + $0x218] ss:$24 sps:$4 sm:$0xff]   ;;  %v2134_v47 = vld [vmem:[#allocation5 + $0x24c] ss:$24 sps:$4 sm:$0xff]  }
  0x7a   : > { %832 = vmatprep.subr.bf16.mxu0 %v2095_v18  ;;  %v245_v46 = vld [vmem:[%s2642_s10 + $0x8] sm:$0xff]  ;;  %v244_v0 = vld [vmem:[%s2642_s10] sm:$0xff]  ;;  %v2438_v4 = vmov 0.0   ;;  %vm2439_vm0 = vmmov 0   ;;  %vm954_vm1 = vcmask 523264   ;;  %s2440_s21 = smov 64  }
  0x7b   : > { %v247_v48 = vpack.c.bf16 %v245_v46, %v245_v46  ;;  %v2137_v49 = vld [vmem:[#allocation5 + $0x214] ss:$24 sps:$4 sm:$0xff]   ;;  %v2139_v50 = vld [vmem:[#allocation5 + $0x210] ss:$24 sps:$4 sm:$0xff]   ;;  %v2143_v52 = vld [vmem:[#allocation5 + $0x244] ss:$24 sps:$4 sm:$0xff]   ;;  %v2654_v3 = vpack.c.bf16 %v244_v0, %v244_v0 }
  0x7c   : > { %874 = vmatpush1.bf16.msra.mxu1 %v2088_v17  ;;  %v2136_v51 = vld [vmem:[#allocation5 + $0x248] ss:$24 sps:$4 sm:$0xff]   ;;  %v2140_v53 = vld [vmem:[#allocation5 + $0x27c] ss:$24 sps:$4 sm:$0xff]   ;;  %v2142_v55 = vld [vmem:[#allocation5 + $0x278] ss:$24 sps:$4 sm:$0xff]  }
  0x7d   : > { %875 = vmatprep.subr.bf16.mxu1 %v2092_v19  ;;  %833 = vmatpush1.bf16.msra.mxu0 %v2097_v20  ;;  %v2145_v54 = vld [vmem:[#allocation5 + $0x240] ss:$24 sps:$4 sm:$0xff]   ;;  %v2149_v56 = vld [vmem:[#allocation5 + $0x274] ss:$24 sps:$4 sm:$0xff]   ;;  %v2151_v58 = vld [vmem:[#allocation5 + $0x270] ss:$24 sps:$4 sm:$0xff]  }
  0x7e   : > { %834 = vmatprep.subr.bf16.mxu0 %v2101_v22  ;;  %897 = vmatprep.mubr.bf16.mxu1 %v247_v48  ;;  %v2146_v57 = vld [vmem:[#allocation5 + $0x2ac] ss:$24 sps:$4 sm:$0xff]   ;;  %v2148_v59 = vld [vmem:[#allocation5 + $0x2a8] ss:$24 sps:$4 sm:$0xff]   ;;  %v2152_v61 = vld [vmem:[#allocation5 + $0x2dc] ss:$24 sps:$4 sm:$0xff]  }
  0x7f   : > { %856 = vmatprep.mubr.bf16.mxu0 %v247_v48  ;;  %v2155_v60 = vld [vmem:[#allocation5 + $0x2a4] ss:$24 sps:$4 sm:$0xff]   ;;  %v2157_v62 = vld [vmem:[#allocation5 + $0x2a0] ss:$24 sps:$4 sm:$0xff]   ;;  %v2158_v1 = vld [vmem:[#allocation5 + $0x2d4] ss:$24 sps:$4 sm:$0xff]  }
  0x80   : > { %876 = vmatpush1.bf16.msra.mxu1 %v2094_v21  ;;  %v2154_v63 = vld [vmem:[#allocation5 + $0x2d8] ss:$24 sps:$4 sm:$0xff]   ;;  %v2163_v17 = vld [vmem:[#allocation5 + $0x14] ss:$24 sps:$4 sm:$0xff]   ;;  %v2166_v18 = vld [vmem:[#allocation5 + $0x44] ss:$24 sps:$4 sm:$0xff]  }
  0x81   : > { %877 = vmatprep.subr.bf16.mxu1 %v2098_v23  ;;  %835 = vmatpush1.bf16.msra.mxu0 %v2103_v24  ;;  %v2160_v2 = vld [vmem:[#allocation5 + $0x2d0] ss:$24 sps:$4 sm:$0xff]   ;;  %v2164_v19 = vld [vmem:[#allocation5 + $0x40] ss:$24 sps:$4 sm:$0xff]   ;;  %v2169_v20 = vld [vmem:[#allocation5 + $0x74] ss:$24 sps:$4 sm:$0xff]  }
  0x82   : > { %836 = vmatprep.subr.bf16.mxu0 %v2107_v26  ;;  %v2161_v16 = vld [vmem:[#allocation5 + $0x10] ss:$24 sps:$4 sm:$0xff]   ;;  %v2172_v22 = vld [vmem:[#allocation5 + $0xa4] ss:$24 sps:$4 sm:$0xff]   ;;  %v2170_v23 = vld [vmem:[#allocation5 + $0xa0] ss:$24 sps:$4 sm:$0xff]  }
  0x83   : > { %v2167_v21 = vld [vmem:[#allocation5 + $0x70] ss:$24 sps:$4 sm:$0xff]   ;;  %v2175_v24 = vld [vmem:[#allocation5 + $0xd4] ss:$24 sps:$4 sm:$0xff]   ;;  %v2178_v26 = vld [vmem:[#allocation5 + $0x104] ss:$24 sps:$4 sm:$0xff]  }
  0x84   : > { %878 = vmatpush1.bf16.msra.mxu1 %v2100_v25  ;;  %v2173_v25 = vld [vmem:[#allocation5 + $0xd0] ss:$24 sps:$4 sm:$0xff]   ;;  %v2208_v46 = vld [vmem:[#allocation5 + $0x2e4] ss:$24 sps:$4 sm:$0xff]   ;;  %vm1003_vm3 = vcmask 64512   ;;  %vm1020_vm4 = vcmask 1043456  }
  0x85   : > { %879 = vmatprep.subr.bf16.mxu1 %v2104_v27  ;;  %837 = vmatpush1.bf16.msra.mxu0 %v2109_v28  ;;  %v2176_v27 = vld [vmem:[#allocation5 + $0x100] ss:$24 sps:$4 sm:$0xff]   ;;  %v2181_v28 = vld [vmem:[#allocation5 + $0x134] ss:$24 sps:$4 sm:$0xff]   ;;  %s1921_s6 = sshll.u32 %s2488_s19, 8  ;;  %s242_s25 = scalar_lea.vmem [#allocation8], %s1775_s8 }
  0x86   : > { %838 = vmatprep.subr.bf16.mxu0 %v2113_v30  ;;  %v2184_v30 = vld [vmem:[#allocation5 + $0x164] ss:$24 sps:$4 sm:$0xff]   ;;  %s1677_s7 = sshll.u32 %s242_s25, 4  ;;  %s2762_s24 = scalar_lea.hbm %s2810_s4, %s1921_s6  ;;  %s2764_s7 = int_to_ptr.vmem [resolvable:$true] %s1677_s7 }
  0x87   : > { %s1663_s19 = scalar_lea.sflag [#allocation4], %s2636_s5  ;;  %s2359_s26 = scalar_lea.vmem %s2764_s7, 256 }
  0x88   : > { %880 = vmatpush1.bf16.msra.mxu1 %v2106_v29  ;;  %v2179_v29 = vld [vmem:[#allocation5 + $0x130] ss:$24 sps:$4 sm:$0xff]   ;;  %p2360_p11 = scmp.ne.s32.totalorder %s2764_s7, %s2359_s26  ;;  %p2824_p0 = scmp.ne.s32.totalorder %s2819_s20, 0 }
  0x89   : > { %881 = vmatprep.subr.bf16.mxu1 %v2110_v31  ;;  %839 = vmatpush1.bf16.msra.mxu0 %v2115_v32  ;;  %v2182_v31 = vld [vmem:[#allocation5 + $0x160] ss:$24 sps:$4 sm:$0xff]   ;;  %v2187_v32 = vld [vmem:[#allocation5 + $0x194] ss:$24 sps:$4 sm:$0xff]   ;;  %s2441_s28 = smov [#allocation8]  }
  0x8a   : > { %840 = vmatprep.subr.bf16.mxu0 %v2119_v34  ;;  %v2190_v34 = vld [vmem:[#allocation5 + $0x1c4] ss:$24 sps:$4 sm:$0xff]   ;;  %p2361_p1 = pnand %p2360_p11, %p2824_p0  ;;  %s2363_s27 = sshll.u32 %s2441_s28, 4  ;;  %s2364_s27 = int_to_ptr.vmem [resolvable:$false] %s2363_s27 }
  0x8b   : > { %s2365_s29 = scalar_lea.vmem %s2364_s27, 512  ;;  %p2366_p5 = scmp.lt.s32.totalorder %s2764_s7, %s2364_s27 }
  0x8c   : > { %882 = vmatpush1.bf16.msra.mxu1 %v2112_v33  ;;  %v2185_v33 = vld [vmem:[#allocation5 + $0x190] ss:$24 sps:$4 sm:$0xff]   ;;  %p2362_p3 = pneg %p2361_p1  ;;  %p2367_p9 = scmp.lt.s32.totalorder %s2365_s29, %s2359_s26 }
  0x8d   : > { %883 = vmatprep.subr.bf16.mxu1 %v2116_v35  ;;  %841 = vmatpush1.bf16.msra.mxu0 %v2121_v36  ;;  %v2188_v35 = vld [vmem:[#allocation5 + $0x1c0] ss:$24 sps:$4 sm:$0xff]   ;;  %v2193_v36 = vld [vmem:[#allocation5 + $0x1f4] ss:$24 sps:$4 sm:$0xff]  }
  0x8e   : > { %842 = vmatprep.subr.bf16.mxu0 %v2125_v38  ;;  %v2196_v38 = vld [vmem:[#allocation5 + $0x224] ss:$24 sps:$4 sm:$0xff]   ;;  %p2368_p12 = por %p2367_p9, %p2366_p5 }
  0x90   : > { %884 = vmatpush1.bf16.msra.mxu1 %v2118_v37  ;;  %v2191_v37 = vld [vmem:[#allocation5 + $0x1f0] ss:$24 sps:$4 sm:$0xff]   ;;  %p2369_p2 = pnand %p2368_p12, %p2362_p3 }
  0x91   : > { %885 = vmatprep.subr.bf16.mxu1 %v2122_v39  ;;  %843 = vmatpush1.bf16.msra.mxu0 %v2127_v40  ;;  %v2194_v39 = vld [vmem:[#allocation5 + $0x220] ss:$24 sps:$4 sm:$0xff]   ;;  %v2199_v40 = vld [vmem:[#allocation5 + $0x254] ss:$24 sps:$4 sm:$0xff]  }
  0x92   : > { %844 = vmatprep.subr.bf16.mxu0 %v2131_v42  ;;  %v2202_v42 = vld [vmem:[#allocation5 + $0x284] ss:$24 sps:$4 sm:$0xff]  }
  0x94   : > { %886 = vmatpush1.bf16.msra.mxu1 %v2124_v41  ;;  %v2197_v41 = vld [vmem:[#allocation5 + $0x250] ss:$24 sps:$4 sm:$0xff]  }
  0x95   : > { %887 = vmatprep.subr.bf16.mxu1 %v2128_v43  ;;  %845 = vmatpush1.bf16.msra.mxu0 %v2133_v45  ;;  %v2200_v43 = vld [vmem:[#allocation5 + $0x280] ss:$24 sps:$4 sm:$0xff]   ;;  %v2203_v45 = vld [vmem:[#allocation5 + $0x2b0] ss:$24 sps:$4 sm:$0xff]  }
  0x96   : > { %846 = vmatprep.subr.bf16.mxu0 %v2137_v49 }
  0x98   : > { %888 = vmatpush1.bf16.msra.mxu1 %v2130_v44  ;;  %v2205_v44 = vld [vmem:[#allocation5 + $0x2b4] ss:$24 sps:$4 sm:$0xff]  }
  0x99   : > { %889 = vmatprep.subr.bf16.mxu1 %v2134_v47  ;;  %847 = vmatpush1.bf16.msra.mxu0 %v2139_v50  ;;  %v2206_v47 = vld [vmem:[#allocation5 + $0x2e0] ss:$24 sps:$4 sm:$0xff]  }
  0x9a   : > { %848 = vmatprep.subr.bf16.mxu0 %v2143_v52 }
  0x9c   : > { %890 = vmatpush1.bf16.msra.mxu1 %v2136_v51 }
  0x9d   : > { %891 = vmatprep.subr.bf16.mxu1 %v2140_v53  ;;  %849 = vmatpush1.bf16.msra.mxu0 %v2145_v54 }
  0x9e   : > { %850 = vmatprep.subr.bf16.mxu0 %v2149_v56 }
  0xa0   : > { %892 = vmatpush1.bf16.msra.mxu1 %v2142_v55 }
  0xa1   : > { %893 = vmatprep.subr.bf16.mxu1 %v2146_v57  ;;  %851 = vmatpush1.bf16.msra.mxu0 %v2151_v58 }
  0xa2   : > { %852 = vmatprep.subr.bf16.mxu0 %v2155_v60 }
  0xa4   : > { %894 = vmatpush1.bf16.msra.mxu1 %v2148_v59 }
  0xa5   : > { %895 = vmatprep.subr.bf16.mxu1 %v2152_v61  ;;  %853 = vmatpush1.bf16.msra.mxu0 %v2157_v62 }
  0xa6   : > { %854 = vmatprep.subr.bf16.mxu0 %v2158_v1 }
  0xa8   : > { %896 = vmatpush1.bf16.msra.mxu1 %v2154_v63 }
  0xa9   : > { %855 = vmatpush1.bf16.msra.mxu0 %v2160_v2  ;;  %1938 = vmatprep.subr.bf16.mxu1 %v2438_v4 }
  0xaa   : > { %906 = vmatprep.subr.bf16.mxu0 %v2163_v17 }
  0xab   : > { %898 = vmatmul.mubr.bf16.vlgmr.msra.gmra.mrb[0].mxu1 %v2654_v3 }
  0xac   : > { %857 = vmatmul.mubr.bf16.vlgmr.msra.gmra.mrb[0].mxu0 %v2654_v3  ;;  %1940 = vmatprep.mubr.msk.bf16.mxu1 %vm2439_vm0, %v2438_v4 }
  0xad   : > { %938 = vmatprep.mubr.bf16.mxu0 %v247_v48  ;;  %907 = vmatpush1.bf16.msra.mxu0 %v2161_v16  ;;  %v947_v48 = vlaneseq }
  0xae   : > { %908 = vmatprep.subr.bf16.mxu0 %v2166_v18 }
  0xaf   : > { %v2673_v49 = vshrl.u32 %v947_v48, 7  ;;  %v2675_v50 = vand.u32 127, %v947_v48 }
  0xb1   : > { %909 = vmatpush1.bf16.msra.mxu0 %v2164_v19  ;;  %vm951_vm2 = vcmp.le.s32.totalorder %v2675_v50, %v2673_v49 }
  0xb2   : > { %910 = vmatprep.subr.bf16.mxu0 %v2169_v20 }
  0xb5   : > { %911 = vmatpush1.bf16.msra.mxu0 %v2167_v21 }
  0xb6   : > { %912 = vmatprep.subr.bf16.mxu0 %v2172_v22 }
  0xb9   : > { %913 = vmatpush1.bf16.msra.mxu0 %v2170_v23 }
  0xba   : > { %914 = vmatprep.subr.bf16.mxu0 %v2175_v24 }
  0xbd   : > { %915 = vmatpush1.bf16.msra.mxu0 %v2173_v25 }
  0xbe   : > { %916 = vmatprep.subr.bf16.mxu0 %v2178_v26 }
  0xc1   : > { %917 = vmatpush1.bf16.msra.mxu0 %v2176_v27 }
  0xc2   : > { %918 = vmatprep.subr.bf16.mxu0 %v2181_v28 }
  0xc5   : > { %919 = vmatpush1.bf16.msra.mxu0 %v2179_v29 }
  0xc6   : > { %920 = vmatprep.subr.bf16.mxu0 %v2184_v30 }
  0xc9   : > { %921 = vmatpush1.bf16.msra.mxu0 %v2182_v31 }
  0xca   : > { %922 = vmatprep.subr.bf16.mxu0 %v2187_v32 }
  0xcd   : > { %923 = vmatpush1.bf16.msra.mxu0 %v2185_v33 }
  0xce   : > { %924 = vmatprep.subr.bf16.mxu0 %v2190_v34 }
  0xd1   : > { %925 = vmatpush1.bf16.msra.mxu0 %v2188_v35 }
  0xd2   : > { %926 = vmatprep.subr.bf16.mxu0 %v2193_v36 }
  0xd5   : > { %927 = vmatpush1.bf16.msra.mxu0 %v2191_v37 }
  0xd6   : > { %928 = vmatprep.subr.bf16.mxu0 %v2196_v38 }
  0xd9   : > { %929 = vmatpush1.bf16.msra.mxu0 %v2194_v39 }
  0xda   : > { %930 = vmatprep.subr.bf16.mxu0 %v2199_v40 }
  0xdd   : > { %931 = vmatpush1.bf16.msra.mxu0 %v2197_v41 }
  0xde   : > { %932 = vmatprep.subr.bf16.mxu0 %v2202_v42 }
  0xe1   : > { %933 = vmatpush1.bf16.msra.mxu0 %v2200_v43 }
  0xe2   : > { %934 = vmatprep.subr.bf16.mxu0 %v2205_v44 }
  0xe5   : > { %935 = vmatpush1.bf16.msra.mxu0 %v2203_v45 }
  0xe6   : > { %936 = vmatprep.subr.bf16.mxu0 %v2208_v46 }
  0xe9   : > { %937 = vmatpush1.bf16.msra.mxu0 %v2206_v47 }
  0xec   : > { %939 = vmatmul.mubr.bf16.vlgmr.msra.gmra.mrb[4].mxu0 %v2654_v3 }
 0x17e   : > { %v899_v5 = vpop.f32.mrb[0].mxu1 }
 0x17f   : > { %v953_v6 = vpack.c.bf16 %v899_v5, %v899_v5  ;;  %v2661_v7 = vpop.f32.mrb[1].mxu1  ;;  %v858_v11 = vpop.f32.mrb[0].mxu0 }
 0x180   : > { %v903_v8 = vpop.f32.mrb[2].mxu1  ;;  %v952_v12 = vpack.c.bf16 %v858_v11, %v858_v11  ;;  %v2665_v13 = vpop.f32.mrb[1].mxu0  ;;  %v1180_v35 = vpack.c.bf16 %v2661_v7, %v2661_v7 }
 0x181   : > { %v959_v9 = vsel %vm954_vm1, %v953_v6, 0  ;;  %1068 = vrot.lane.b32.xlu1 %v953_v6, %s2440_s21  ;;  %v904_v10 = vpop.f32.mrb[3].mxu1  ;;  %v862_v14 = vpop.f32.mrb[2].mxu0  ;;  %v1179_v40 = vpack.c.bf16 %v2665_v13, %v2665_v13 }
 0x182   : > { %1939 = vmatpush3.bf16.xpose.msra.mxu1 %v959_v9  ;;  %v863_v15 = vpop.f32.mrb[3].mxu0  ;;  %v1185_v38 = vsel %vm954_vm1, %v1180_v35, 0 }
 0x183   : > { %1944 = vmatprep.subr.bf16.mxu1 %v2438_v4 }
 0x185   : > { %1065 = vrot.lane.b32.xlu1 %v952_v12, %s2440_s21 }
 0x189   : > { %1941 = vmatmul.mubr.msk.bf16.vlgmr.msra.gmra.mrb[4].mxu1 %vm954_vm1, %v952_v12 }
 0x18a   : > { %1946 = vmatprep.mubr.msk.bf16.mxu1 %vm2439_vm0, %v2438_v4 }
 0x1bf   : > { %v940_v63 = vpop.f32.mrb[4].mxu0 }
 0x1c0   : > { %v942_v0 = vpop.f32.mrb[5].mxu0  ;;  %v1016_v2 = vpack.c.bf16 %v940_v63, %v940_v63 }
 0x1c1   : > { %v944_v1 = vpop.f32.mrb[6].mxu0  ;;  %v1241_v39 = vpack.c.bf16 %v942_v0, %v942_v0 }
 0x1c2   : > { %v945_v3 = vpop.f32.mrb[7].mxu0  ;;  %v1022_v5 = vsel %vm1020_vm4, %v1016_v2, 0 }
 0x1c3   : > { %1945 = vmatpush3.bf16.msra.mxu1 %v1022_v5  ;;  %v1246_v41 = vsel %vm1020_vm4, %v1241_v39, 0 }
 0x1c4   : > { %1950 = vmatprep.subr.bf16.mxu1 %v2438_v4 }
 0x1f3   : > { %v1069_v10 = vpop.permute.xlu1 %1068 }
 0x1f4   : > { %v1074_v12 = vsel %vm954_vm1, %v1069_v10, 0 }
 0x1f7   : > { %v1066_v14 = vpop.permute.xlu1 %1065 }
 0x25c   : > { %v995_v51 = vpop.f32.mrb[4].mxu1 }
 0x25d   : > { %v1001_v52 = vmul.f32 0.0625, %v995_v51  ;;  %v1942_v53 = vpop.f32.mrb[5].mxu1 }
 0x25e   : > { %v998_v54 = vpop.f32.mrb[6].mxu1 }
 0x25f   : > { %v1943_v55 = vpop.f32.mrb[7].mxu1  ;;  %v1002_v56 = vsel %vm951_vm2, %v1001_v52, -1e+30 }
 0x260   : > { %v1004_v57 = vsel %vm1003_vm3, %v1002_v56, -inf }
 0x261   : > { %1005 = vmax.xlane.f32.xlu0 %v1004_v57 }
 0x2ee   : > { %v1006_v58 = vpop.xlane.xlu0 %1005 }
 0x2ef   : > { %v1007_v59 = vsub.f32 %v1002_v56, %v1006_v58 }
 0x2f1   : > { %v1008_v60 = vmul.f32 1.442695, %v1007_v59 }
 0x2f3   : > { %2257 = vpow2.f32 %v1008_v60 }
 0x2fd   : > { %v2258_v61 = vpop.eup %2257 }
 0x2fe   : > { %v1010_v62 = vsel %vm1003_vm3, %v2258_v61, 0.0 }
 0x2ff   : > { %1011 = vadd.xlane.f32.xlu0 %v1010_v62 }
 0x38c   : > { %v1012_v6 = vpop.xlane.xlu0 %1011 }
 0x38d   : > { %2259 = vrcp.f32 %v1012_v6 }
 0x397   : > { %v2260_v8 = vpop.eup %2259 }
 0x398   : > { %v1014_v9 = vmul.f32 %v2260_v8, %v2258_v61 }
 0x39a   : > { %v1015_v11 = vpack.c.bf16 %v1014_v9, %v1014_v9 }
 0x39c   : > { %1947 = vmatmul.mubr.msk.bf16.vlgmr.msra.gmra.mrb[8].mxu1 %vm1003_vm3, %v1015_v11 }
 0x39d   : > { %1951 = vmatpush3.bf16.xpose.msra.mxu1 %v1074_v12  ;;  %1952 = vmatprep.mubr.msk.bf16.mxu1 %vm2439_vm0, %v2438_v4 }
 0x39e   : > { %1956 = vmatprep.subr.bf16.mxu1 %v2438_v4 }
 0x3a4   : > { %1953 = vmatmul.mubr.msk.bf16.vlgmr.msra.gmra.mrb[12].mxu1 %vm954_vm1, %v1066_v14 }
 0x3a5   : > { %1958 = vmatprep.mubr.msk.bf16.mxu1 %vm2439_vm0, %v2438_v4 }
 0x46f   : > { %v2694_v15 = vpop.f32.mrb[8].mxu1 }
 0x470   : > { %v1948_v16 = vpop.f32.mrb[9].mxu1 }
 0x471   : > { %v1061_v17 = vpop.f32.mrb[10].mxu1 }
 0x472   : > { %v1949_v18 = vpop.f32.mrb[11].mxu1 }
 0x477   : > { %v1110_v19 = vpop.f32.mrb[12].mxu1 }
 0x478   : > { %v1116_v20 = vmul.f32 0.0625, %v1110_v19  ;;  %v1954_v21 = vpop.f32.mrb[13].mxu1 }
 0x479   : > { %v1113_v22 = vpop.f32.mrb[14].mxu1 }
 0x47a   : > { %v1955_v23 = vpop.f32.mrb[15].mxu1  ;;  %v1117_v24 = vsel %vm951_vm2, %v1116_v20, -1e+30 }
 0x47b   : > { %v1118_v25 = vsel %vm1003_vm3, %v1117_v24, -inf }
 0x47c   : > { %1119 = vmax.xlane.f32.xlu0 %v1118_v25  ;;  %v2209_v25 = vld [vmem:[#allocation7] ss:$8 sps:$4 sm:$0xff]  }
 0x492   : > { %1131 = vrot.lane.b32.xlu0 %v1016_v2, %s2440_s21 }
 0x509   : > { %v1120_v26 = vpop.xlane.xlu0 %1119 }
 0x50a   : > { %v1121_v27 = vsub.f32 %v1117_v24, %v1120_v26  ;;  %v2211_v26 = vld [vmem:[#allocation7 + $0x4] ss:$8 sps:$4 sm:$0xff]  }
 0x50b   : > { %1619 = vmatprep.subr.bf16.mxu0 %v2211_v26 }
 0x50c   : > { %v1122_v28 = vmul.f32 1.442695, %v1121_v27  ;;  %v2214_v27 = vld [vmem:[#allocation7 + $0x14] ss:$8 sps:$4 sm:$0xff]   ;;  %1620 = vmatpush1.bf16.msra.mxu0 %v2209_v25 }
 0x50d   : > { %v1132_v29 = vpop.permute.xlu0 %1131  ;;  %1621 = vmatprep.subr.bf16.mxu0 %v2214_v27 }
 0x50e   : > { %2261 = vpow2.f32 %v1122_v28  ;;  %v1137_v30 = vsel %vm1020_vm4, %v1132_v29, 0  ;;  %v2212_v28 = vld [vmem:[#allocation7 + $0x10] ss:$8 sps:$4 sm:$0xff]   ;;  %v2217_v29 = vld [vmem:[#allocation7 + $0x24] ss:$8 sps:$4 sm:$0xff]  }
 0x50f   : > { %1957 = vmatpush3.bf16.msra.mxu1 %v1137_v30  ;;  %v2215_v30 = vld [vmem:[#allocation7 + $0x20] ss:$8 sps:$4 sm:$0xff]  }
 0x510   : > { %1962 = vmatprep.subr.bf16.mxu1 %v2438_v4  ;;  %1622 = vmatpush1.bf16.msra.mxu0 %v2212_v28 }
 0x511   : > { %1623 = vmatprep.subr.bf16.mxu0 %v2217_v29 }
 0x514   : > { %1624 = vmatpush1.bf16.msra.mxu0 %v2215_v30 }
 0x518   : > { %v2262_v31 = vpop.eup %2261 }
 0x519   : > { %v1124_v32 = vsel %vm1003_vm3, %v2262_v31, 0.0 }
 0x51a   : > { %1125 = vadd.xlane.f32.xlu1 %v1124_v32  ;;  %v2218_v32 = vld [vmem:[#allocation7 + $0x30] ss:$8 sps:$4 sm:$0xff]  }
 0x5a7   : > { %v1126_v33 = vpop.xlane.xlu1 %1125 }
 0x5a8   : > { %2263 = vrcp.f32 %v1126_v33  ;;  %v2223_v33 = vld [vmem:[#allocation7 + $0x44] ss:$8 sps:$4 sm:$0xff]  }
 0x5b2   : > { %v2264_v34 = vpop.eup %2263 }
 0x5b3   : > { %v1128_v36 = vmul.f32 %v2264_v34, %v2262_v31  ;;  %v2220_v31 = vld [vmem:[#allocation7 + $0x34] ss:$8 sps:$4 sm:$0xff]   ;;  %v2221_v34 = vld [vmem:[#allocation7 + $0x40] ss:$8 sps:$4 sm:$0xff]  }
 0x5b4   : > { %1625 = vmatprep.subr.bf16.mxu0 %v2220_v31 }
 0x5b5   : > { %v1129_v37 = vpack.c.bf16 %v1128_v36, %v1128_v36  ;;  %1626 = vmatpush1.bf16.msra.mxu0 %v2218_v32  ;;  %v2224_v36 = vld [vmem:[#allocation7 + $0x50] ss:$8 sps:$4 sm:$0xff]  }
 0x5b6   : > { %1627 = vmatprep.subr.bf16.mxu0 %v2223_v33 }
 0x5b7   : > { %1959 = vmatmul.mubr.msk.bf16.vlgmr.msra.gmra.mrb[16].mxu1 %vm1003_vm3, %v1129_v37  ;;  %v2229_v37 = vld [vmem:[#allocation7 + $0x64] ss:$8 sps:$4 sm:$0xff]  }
 0x5b8   : > { %1963 = vmatpush3.bf16.xpose.msra.mxu1 %v1185_v38  ;;  %1964 = vmatprep.mubr.msk.bf16.mxu1 %vm2439_vm0, %v2438_v4  ;;  %v2227_v38 = vld [vmem:[#allocation7 + $0x60] ss:$8 sps:$4 sm:$0xff]  }
 0x5b9   : > { %1968 = vmatprep.subr.bf16.mxu1 %v2438_v4  ;;  %1628 = vmatpush1.bf16.msra.mxu0 %v2221_v34 }
 0x5bf   : > { %1965 = vmatmul.mubr.msk.bf16.vlgmr.msra.gmra.mrb[20].mxu1 %vm954_vm1, %v1179_v40 }
 0x5c0   : > { %1969 = vmatpush3.bf16.msra.mxu1 %v1246_v41  ;;  %1970 = vmatprep.mubr.msk.bf16.mxu1 %vm2439_vm0, %v2438_v4  ;;  %v2235_v41 = vld [vmem:[#allocation7 + $0x84] ss:$8 sps:$4 sm:$0xff]  }
 0x5c1   : > { %1974 = vmatprep.subr.bf16.mxu1 %v2438_v4 }
 0x68a   : > { %v2718_v7 = vpop.f32.mrb[16].mxu1 }
 0x68b   : > { %v1960_v42 = vpop.f32.mrb[17].mxu1 }
 0x68c   : > { %v1176_v43 = vpop.f32.mrb[18].mxu1  ;;  %v2233_v42 = vld [vmem:[#allocation7 + $0x80] ss:$8 sps:$4 sm:$0xff]  }
 0x68d   : > { %v1961_v44 = vpop.f32.mrb[19].mxu1  ;;  %v2238_v43 = vld [vmem:[#allocation7 + $0x94] ss:$8 sps:$4 sm:$0xff]  }
 0x68e   : > { %v2236_v44 = vld [vmem:[#allocation7 + $0x90] ss:$8 sps:$4 sm:$0xff]  }
 0x692   : > { %v1221_v45 = vpop.f32.mrb[20].mxu1 }
 0x693   : > { %v1227_v46 = vmul.f32 0.0625, %v1221_v45  ;;  %v1966_v47 = vpop.f32.mrb[21].mxu1  ;;  %v2241_v45 = vld [vmem:[#allocation7 + $0xa4] ss:$8 sps:$4 sm:$0xff]  }
 0x694   : > { %v1224_v48 = vpop.f32.mrb[22].mxu1  ;;  %v2244_v47 = vld [vmem:[#allocation7 + $0xb4] ss:$8 sps:$4 sm:$0xff]  }
 0x695   : > { %v1967_v13 = vpop.f32.mrb[23].mxu1  ;;  %v1228_v51 = vsel %vm951_vm2, %v1227_v46, -1e+30  ;;  %v2239_v46 = vld [vmem:[#allocation7 + $0xa0] ss:$8 sps:$4 sm:$0xff]  }
 0x696   : > { %v1229_v52 = vsel %vm1003_vm3, %v1228_v51, -inf  ;;  %v2242_v48 = vld [vmem:[#allocation7 + $0xb0] ss:$8 sps:$4 sm:$0xff]   ;;  %v2247_v13 = vld [vmem:[#allocation7 + $0xc4] ss:$8 sps:$4 sm:$0xff]  }
 0x697   : > { %1230 = vmax.xlane.f32.xlu0 %v1229_v52  ;;  %v2250_v52 = vld [vmem:[#allocation7 + $0xd4] ss:$8 sps:$4 sm:$0xff]  }
 0x6ad   : > { %1289 = vrot.lane.b32.xlu0 %v1179_v40, %s2440_s21  ;;  %v2230_v40 = vld [vmem:[#allocation7 + $0x70] ss:$8 sps:$4 sm:$0xff]  }
 0x724   : > { %v1231_v53 = vpop.xlane.xlu0 %1230 }
 0x725   : > { %v1232_v54 = vsub.f32 %v1228_v51, %v1231_v53  ;;  %v2245_v51 = vld [vmem:[#allocation7 + $0xc0] ss:$8 sps:$4 sm:$0xff]   ;;  %v2248_v53 = vld [vmem:[#allocation7 + $0xd0] ss:$8 sps:$4 sm:$0xff]  }
 0x727   : > { %v1233_v55 = vmul.f32 1.442695, %v1232_v54  ;;  %v2253_v54 = vld [vmem:[#allocation7 + $0xe4] ss:$8 sps:$4 sm:$0xff]  }
 0x728   : > { %v1290_v0 = vpop.permute.xlu0 %1289 }
 0x729   : > { %2265 = vpow2.f32 %v1233_v55  ;;  %v2251_v55 = vld [vmem:[#allocation7 + $0xe0] ss:$8 sps:$4 sm:$0xff]  }
 0x733   : > { %v2266_v56 = vpop.eup %2265 }
 0x734   : > { %v1235_v57 = vsel %vm1003_vm3, %v2266_v56, 0.0 }
 0x735   : > { %1236 = vadd.xlane.f32.xlu1 %v1235_v57  ;;  %v2254_v57 = vld [vmem:[#allocation7 + $0xf0] ss:$8 sps:$4 sm:$0xff]  }
 0x746   : > { %1292 = vrot.lane.b32.xlu1 %v1180_v35, %s2440_s21  ;;  %v2226_v35 = vld [vmem:[#allocation7 + $0x54] ss:$8 sps:$4 sm:$0xff]  }
 0x747   : > { %1629 = vmatprep.subr.bf16.mxu0 %v2226_v35 }
 0x748   : > { %1630 = vmatpush1.bf16.msra.mxu0 %v2224_v36 }
 0x749   : > { %1631 = vmatprep.subr.bf16.mxu0 %v2229_v37 }
 0x74c   : > { %1632 = vmatpush1.bf16.msra.mxu0 %v2227_v38 }
 0x7c2   : > { %v1237_v58 = vpop.xlane.xlu1 %1236 }
 0x7c3   : > { %2267 = vrcp.f32 %v1237_v58 }
 0x7c6   : > { %v1293_v61 = vpop.permute.xlu1 %1292 }
 0x7c7   : > { %v1298_v63 = vsel %vm954_vm1, %v1293_v61, 0 }
 0x7cd   : > { %v2268_v59 = vpop.eup %2267 }
 0x7ce   : > { %v1239_v60 = vmul.f32 %v2268_v59, %v2266_v56  ;;  %v2256_v56 = vld [vmem:[#allocation7 + $0xf4] ss:$8 sps:$4 sm:$0xff]  }
 0x7d0   : > { %v1240_v62 = vpack.c.bf16 %v1239_v60, %v1239_v60 }
 0x7d2   : > { %1971 = vmatmul.mubr.msk.bf16.vlgmr.msra.gmra.mrb[24].mxu1 %vm1003_vm3, %v1240_v62 }
 0x7d3   : > { %1975 = vmatpush3.bf16.xpose.msra.mxu1 %v1298_v63  ;;  %1976 = vmatprep.mubr.msk.bf16.mxu1 %vm2439_vm0, %v2438_v4 }
 0x7d4   : > { %1980 = vmatprep.subr.bf16.mxu1 %v2438_v4 }
 0x7da   : > { %1977 = vmatmul.mubr.msk.bf16.vlgmr.msra.gmra.mrb[28].mxu1 %vm954_vm1, %v1290_v0 }
 0x7db   : > { %1982 = vmatprep.mubr.msk.bf16.mxu1 %vm2439_vm0, %v2438_v4 }
 0x8a5   : > { %v2735_v1 = vpop.f32.mrb[24].mxu1 }
 0x8a6   : > { %v1972_v2 = vpop.f32.mrb[25].mxu1 }
 0x8a7   : > { %v1285_v3 = vpop.f32.mrb[26].mxu1 }
 0x8a8   : > { %v1973_v5 = vpop.f32.mrb[27].mxu1 }
 0x8ad   : > { %v1334_v6 = vpop.f32.mrb[28].mxu1 }
 0x8ae   : > { %v1340_v8 = vmul.f32 0.0625, %v1334_v6  ;;  %v1978_v9 = vpop.f32.mrb[29].mxu1 }
 0x8af   : > { %v1337_v10 = vpop.f32.mrb[30].mxu1  ;;  %v1447_v9 = vld [vmem:[%s2809_s3] sm:$0x3] }
 0x8b0   : > { %v1979_v11 = vpop.f32.mrb[31].mxu1  ;;  %v1341_v12 = vsel %vm951_vm2, %v1340_v8, -1e+30  ;;  %v1455_v10 = vsub.s32 1, %v2673_v49 }
 0x8b1   : > { %v1342_v14 = vsel %vm1003_vm3, %v1341_v12, -inf }
 0x8b2   : > { %1343 = vmax.xlane.f32.xlu1 %v1342_v14 }
 0x8c3   : > { %1355 = vrot.lane.b32.xlu1 %v1241_v39, %s2440_s21  ;;  %v2232_v39 = vld [vmem:[#allocation7 + $0x74] ss:$8 sps:$4 sm:$0xff]  }
 0x8c4   : > { %1633 = vmatprep.subr.bf16.mxu0 %v2232_v39 }
 0x8c5   : > { %1634 = vmatpush1.bf16.msra.mxu0 %v2230_v40 }
 0x8c6   : > { %1635 = vmatprep.subr.bf16.mxu0 %v2235_v41 }
 0x8c9   : > { %1636 = vmatpush1.bf16.msra.mxu0 %v2233_v42 }
 0x8ca   : > { %1637 = vmatprep.subr.bf16.mxu0 %v2238_v43 }
 0x8cd   : > { %1638 = vmatpush1.bf16.msra.mxu0 %v2236_v44 }
 0x8ce   : > { %1639 = vmatprep.subr.bf16.mxu0 %v2241_v45 }
 0x8d1   : > { %1640 = vmatpush1.bf16.msra.mxu0 %v2239_v46 }
 0x8d2   : > { %1641 = vmatprep.subr.bf16.mxu0 %v2244_v47 }
 0x8d5   : > { %1642 = vmatpush1.bf16.msra.mxu0 %v2242_v48 }
 0x8d6   : > { %1643 = vmatprep.subr.bf16.mxu0 %v2247_v13 }
 0x8d9   : > { %1644 = vmatpush1.bf16.msra.mxu0 %v2245_v51 }
 0x8da   : > { %1645 = vmatprep.subr.bf16.mxu0 %v2250_v52 }
 0x8dd   : > { %1646 = vmatpush1.bf16.msra.mxu0 %v2248_v53 }
 0x8de   : > { %1647 = vmatprep.subr.bf16.mxu0 %v2253_v54 }
 0x8e1   : > { %1648 = vmatpush1.bf16.msra.mxu0 %v2251_v55 }
 0x8e2   : > { %1649 = vmatprep.subr.bf16.mxu0 %v2256_v56 }
 0x8e5   : > { %1650 = vmatpush1.bf16.msra.mxu0 %v2254_v57 }
 0x93f   : > { %v1344_v4 = vpop.xlane.xlu1 %1343 }
 0x940   : > { %v1345_v16 = vsub.f32 %v1341_v12, %v1344_v4  ;;  %v1456_v12 = vrot.slane %v1447_v9, %v1455_v10 }
 0x942   : > { %v1346_v17 = vmul.f32 1.442695, %v1345_v16 }
 0x943   : > { %v1356_v18 = vpop.permute.xlu1 %1355 }
 0x944   : > { %2269 = vpow2.f32 %v1346_v17  ;;  %v1361_v19 = vsel %vm1020_vm4, %v1356_v18, 0 }
 0x945   : > { %1981 = vmatpush3.bf16.msra.mxu1 %v1361_v19 }
 0x94e   : > { %v2270_v20 = vpop.eup %2269 }
 0x94f   : > { %v1348_v21 = vsel %vm1003_vm3, %v2270_v20, 0.0 }
 0x950   : > { %1349 = vadd.xlane.f32.xlu0 %v1348_v21 }
 0x9dd   : > { %v1350_v22 = vpop.xlane.xlu0 %1349 }
 0x9de   : > { %2271 = vrcp.f32 %v1350_v22 }
 0x9e8   : > { %v2272_v50 = vpop.eup %2271 }
 0x9e9   : > { %v1352_v23 = vmul.f32 %v2272_v50, %v2270_v20 }
 0x9eb   : > { %v1353_v24 = vpack.c.bf16 %v1352_v23, %v1352_v23 }
 0x9ed   : > { %1983 = vmatmul.mubr.msk.bf16.vlgmr.msra.gmra.mrb[32].mxu1 %vm1003_vm3, %v1353_v24 }
 0xac0   : > { %v1397_v58 = vpop.f32.mrb[32].mxu1 }
 0xac1   : > { %v2060_v59 = vpack.i.bf16 %v2718_v7, %v1397_v58  ;;  %v1984_v60 = vpop.f32.mrb[33].mxu1  ;;  %v1451_v7 = vsub.s32 0, %v2673_v49 }
 0xac2   : > { %v1400_v61 = vpop.f32.mrb[34].mxu1 }
 0xac3   : > { %2061 = vrot.lane.b32.xlu0 %v2060_v59, %s2440_s21  ;;  %v1985_v62 = vpop.f32.mrb[35].mxu1  ;;  %v1452_v11 = vrot.slane %v1447_v9, %v1451_v7 }
 0xb35   : > { %v2062_v63 = vpop.permute.xlu0 %2061 }
 0xb36   : > { %v2064_v0 = vunpack.i.h.bf16 %v2062_v63  ;;  %v2063_v2 = vunpack.i.l.bf16 %v2062_v63 }
 0xb38   : > { %v1411_v3 = vsel %vm954_vm1, %v2694_v15, %v2064_v0  ;;  %v1412_v5 = vsel %vm954_vm1, %v2735_v1, %v2063_v2 }
 0xb39   : > { %v1413_v6 = vpack.c.bf16 %v1411_v3, %v1411_v3  ;;  %v1414_v8 = vpack.c.bf16 %v1412_v5, %v1412_v5 }
 0xb3b   : > { %1651 = vmatprep.mubr.bf16.mxu0 %v1414_v8 }
 0xb3c   : > { %1652 = vmatmul.mubr.bf16.vlgmr.msra.gmra.mrb[8].mxu0 %v1413_v6 }
 0xc0f   : > { %v1653_v15 = vpop.f32.mrb[8].mxu0 }
 0xc10   : > { %v1654_v1 = vadd.f32 %v1653_v15, %v1452_v11  ;;  %v1655_v14 = vpop.f32.mrb[9].mxu0 }
 0xc11   : > { %v1656_v4 = vadd.f32 %v1655_v14, %v1456_v12  ;;  %v1657_v16 = vpop.f32.mrb[10].mxu0 }
 0xc12   : > { %1660 = vst [vmem:[%s242_s25] sm:$0xff] %v1654_v1  ;;  %v1658_v49 = vpop.f32.mrb[11].mxu0 }
 0xc13   : > { %1661 = vst [vmem:[%s242_s25 + $0x8] sm:$0xff] %v1656_v4 }
 0xc14   : > { %2372 = shalt.err (!%p2369_p2)
}
 0xc15   : > { %s2373_s5 = scalar_lea.hbm %s2762_s24, 256  ;;  %s2377_s10 = scalar_lea.hbm %s2810_s4, 512 }
 0xc16   : > { %p2374_p13 = scmp.ne.s32.totalorder %s2762_s24, %s2373_s5  ;;  %p2378_p4 = scmp.lt.u32.totalorder %s2762_s24, %s2810_s4 }
 0xc17   : > { %p2379_p7 = scmp.lt.u32.totalorder %s2377_s10, %s2373_s5  ;;  %p2381_p11 = scmp.lt.u32.totalorder %s2373_s5, %s2762_s24 }
 0xc18   : > { %p2375_p6 = pnand %p2374_p13, %p2824_p0 }
 0xc19   : > { %p2380_p8 = por %p2379_p7, %p2378_p4 }
 0xc1a   : > { %p2376_p10 = pneg %p2375_p6 }
 0xc1b   : > { %p2382_p1 = por %p2381_p11, %p2380_p8 }
 0xc1d   : > { %p2383_p3 = pnand %p2382_p1, %p2376_p10 }
 0xc1f   : > { %2386 = shalt.err (!%p2383_p3)
}
 0xc20   : > { %1996 = dma.vmem_to_hbm [thread:$0]  (%p2824_p0), %s2764_s7, 256, %s2762_s24, %s1663_s19  }
 0xc21 PF: > { %s1689_s30 = sand.u32 1, %s2417_s15   ;;  %p2825_p5 = scmp.ne.s32.totalorder %s2815_s22, 0 }
 0xc22   : > { %p2826_p9 = scmp.ge.s32.totalorder %s2429_s18, 2  ;;  %s1690_s6 = scalar_lea.sflag [#allocation4], %s1689_s30 }
 0xc24   : > { %p2010_p12 = pnand %p2826_p9, %p2825_p5 }
 0xc26   : > { %2412 = dma.done.wait (!%p2010_p12), %s1690_s6, 256  }
 0xc27   : > { %2414 = vsyncadd (!%p2010_p12), %s1690_s6, 4294967040  ;;  %p18_p2 = scmp.ge.s32.totalorder %s2577_s11, 4   ;;  %s2827_s15 = smov %s2421_s16 }
 0xc28   : > { %s2828_s16 = smov %s2425_s17  ;;  %s2829_s17 = smov %s2586_s14 }
 0xc29   : > { %s2830_s18 = smov %s2577_s11  ;;  %20 = sbr.rel (!%p18_p2) target bundleno = 6 (0x6), region = 89 }
 0xc30   :  { %1695 = vsyncpa [#allocation3], 1 }
 0xc31   :  { %1697 = vsyncpa [#allocation3 + $0x1], 1 }
 0xc32   :  { %1698 = vsyncpa [#allocation6], 1 }
 0xc33   :  { %1699 = vsyncpa [#allocation4], 1 }
 0xc34   :  { %1701 = vsyncpa [#allocation4 + $0x1], 1 }

</bundles_post_ra>
